<compile_context>
chip_gen: v6e
topology: v6e:2x2x1
jax: 0.10.0
libtpu: 0.0.40
codegen_flags: <defaults>
</compile_context>

<pallas_src>
import functools

import jax
import jax.numpy as jnp
from jax import lax
from jax.experimental import pallas as pl
from jax.experimental.pallas import tpu as pltpu

LANE = 128                        # lane width (last dim of a vreg)
SUBLANES = 8                      # f32 sublanes per vreg
CHUNK_ROWS = 1024                 # in-kernel fold granularity (512 KiB of f32)
TILE_BYTES_PER_BUFFER = 4 << 20   # 4 MiB per input block -> 16 MiB double-buffered
VMEM_LIMIT_BYTES = 40 << 20       # leaves headroom even on v7x (64 MiB physical)


def _cdiv(a: int, b: int) -> int:
    return -(-a // b)


def _round_up(a: int, b: int) -> int:
    return _cdiv(a, b) * b


def _sublane_pack(dtype) -> int:
    # Rows per packed vreg: 8 for 32-bit, 16 for 16-bit, 32 for 8-bit dtypes.
    return max(SUBLANES, 32 // jnp.dtype(dtype).itemsize)


def _exp_mse_partial_kernel(pred_ref, targ_ref, out_ref, *,
                            rows, tile_rows, chunk_rows, ragged):
    """Accumulate sum((pred - targ)^2) into a resident (8, 128) f32 output."""
    i = pl.program_id(0)

    @pl.when(i == 0)
    def _init():
        out_ref[...] = jnp.zeros_like(out_ref)

    row0 = i * tile_rows  # global row index of this block's first row

    def fold(local_row, n_rows):
        # n_rows is static and a multiple of SUBLANES.
        p = pred_ref[pl.ds(local_row, n_rows), :].astype(jnp.float32)
        t = targ_ref[pl.ds(local_row, n_rows), :].astype(jnp.float32)
        d = p - t
        if ragged:
            # Rows >= `rows` belong to the partial final block and contain
            # unspecified data -> mask them to 0 before squaring. For interior
            # blocks limit >= n_rows so this is an all-true (cheap VPU) select.
            limit = rows - row0 - local_row
            rid = lax.broadcasted_iota(jnp.int32, (n_rows, LANE), 0)
            d = jnp.where(rid < limit, d, 0.0)
        sq = d * d
        # Fold to one (8, 128) vreg of partial sums: pure VPU adds, no XLU.
        return jnp.sum(sq.reshape(n_rows // SUBLANES, SUBLANES, LANE), axis=0)

    n_full = tile_rows // chunk_rows
    rem = tile_rows - n_full * chunk_rows

    partial = jnp.zeros((SUBLANES, LANE), jnp.float32)
    if n_full == 1:
        partial = partial + fold(0, chunk_rows)
    elif n_full > 1:
        def body(c, acc):
            local = pl.multiple_of(c * chunk_rows, chunk_rows)
            return acc + fold(local, chunk_rows)
        partial = lax.fori_loop(0, n_full, body, partial, unroll=n_full <= 16)
    if rem:
        partial = partial + fold(n_full * chunk_rows, rem)

    out_ref[...] += partial


def exp_mse_loss(prediction: jax.Array, target: jax.Array) -> jax.Array:
    """exp(MSE(prediction, target)) over all elements (PyTorch ExpMSELoss)."""
    assert prediction.shape == target.shape, "prediction/target shape mismatch"
    n_elems = prediction.size
    assert n_elems > 0

    pred = prediction.reshape(-1)
    targ = target.reshape(-1)

    # --- alignment (tiny): only pad to one packed vreg row-group ------------
    pack = max(_sublane_pack(pred.dtype), _sublane_pack(targ.dtype))
    align = pack * LANE
    padded_elems = _round_up(n_elems, align)
    pad = padded_elems - n_elems
    if pad:
        # Only for non-aligned sizes. Zero padding contributes 0 to the sum of
        # squares; the mean below divides by the UNPADDED count.
        pred = jnp.pad(pred, (0, pad))
        targ = jnp.pad(targ, (0, pad))
    rows = padded_elems // LANE

    # --- tiling --------------------------------------------------------------
    max_itemsize = max(jnp.dtype(pred.dtype).itemsize, jnp.dtype(targ.dtype).itemsize)
    rows_cap = TILE_BYTES_PER_BUFFER // (LANE * max_itemsize)
    if rows <= rows_cap:
        tile_rows = rows                                  # one exact block
    else:
        tile_rows = (rows_cap // CHUNK_ROWS) * CHUNK_ROWS  # big streaming tile
    steps = _cdiv(rows, tile_rows)
    ragged = (rows % tile_rows) != 0                       # partial final block?

    pred2d = pred.reshape(rows, LANE)
    targ2d = targ.reshape(rows, LANE)

    kernel = functools.partial(
        _exp_mse_partial_kernel,
        rows=rows, tile_rows=tile_rows, chunk_rows=CHUNK_ROWS, ragged=ragged)

    in_map = lambda i: (i, 0)
    partials = pl.pallas_call(
        kernel,
        out_shape=jax.ShapeDtypeStruct((SUBLANES, LANE), jnp.float32),
        grid_spec=pltpu.PrefetchScalarGridSpec(
            num_scalar_prefetch=0,
            grid=(steps,),
            in_specs=[
                pl.BlockSpec((tile_rows, LANE), in_map),
                pl.BlockSpec((tile_rows, LANE), in_map),
            ],
            out_specs=pl.BlockSpec((SUBLANES, LANE), lambda i: (0, 0)),
        ),
        compiler_params=pltpu.CompilerParams(
            dimension_semantics=("arbitrary",),
            vmem_limit_bytes=VMEM_LIMIT_BYTES,
        ),
    )(pred2d, targ2d)

    # Tiny epilogue: combine 8*128 partial sums, multiply by precomputed 1/N, exp.
    inv_n = jnp.float32(1.0 / n_elems)
    return jnp.exp(jnp.sum(partials, dtype=jnp.float32) * inv_n)


if __name__ == "__main__":
    key = jax.random.PRNGKey(0)
    k1, k2 = jax.random.split(key)

    # Small NCHW-shaped prediction/target pair.
    shape = (2, 4, 16, 16)
    prediction = jax.random.normal(k1, shape, dtype=jnp.float32)
    target = jax.random.normal(k2, shape, dtype=jnp.float32)

    loss = exp_mse_loss(prediction, target)
    jax.block_until_ready(loss)

    # Reference check in plain JAX.
    ref = jnp.exp(jnp.mean((prediction - target) ** 2))
    assert jnp.allclose(loss, ref, rtol=1e-5, atol=1e-5), (loss, ref)

    print("KERNEL_OK")
</pallas_src>

<mosaic_0001>
module attributes {stable_mosaic.version = 11 : i64} {
  func.func @_exp_mse_partial_kernel(%arg0: i32, %arg1: memref<16x128xf32, #tpu.memory_space<vmem>>, %arg2: memref<16x128xf32, #tpu.memory_space<vmem>>, %arg3: memref<8x128xf32, #tpu.memory_space<vmem>>) attributes {dimension_semantics = [#tpu.dimension_semantics<arbitrary>], iteration_bounds = array<i64: 1>, scalar_prefetch = 0 : i64, scratch_operands = 0 : i64, tpu.core_type = #tpu.core_type<tc>, window_params = [{transform_indices = @transform_0, window_bounds = array<i64: 16, 128>}, {transform_indices = @transform_1, window_bounds = array<i64: 16, 128>}, {pipeline_mode = #tpu.pipeline_mode<synchronous>, transform_indices = @transform_2, window_bounds = array<i64: 8, 128>}]} {
    %c0_i32 = arith.constant 0 : i32
    %0 = arith.cmpi eq, %arg0, %c0_i32 : i32
    %1 = arith.extui %0 : i1 to i32
    %c0_i32_0 = arith.constant 0 : i32
    %2 = arith.cmpi ne, %1, %c0_i32_0 : i32
    scf.if %2 {
      %cst_9 = arith.constant 0.000000e+00 : f32
      %14 = vector.broadcast %cst_9 : f32 to vector<8x128xf32>
      %c0_10 = arith.constant 0 : index
      %c0_11 = arith.constant 0 : index
      %15 = vector.load %arg3[%c0_10, %c0_11] : memref<8x128xf32, #tpu.memory_space<vmem>>, vector<8x128xf32>
      tpu.vector_store %arg3[%c0_10, %c0_11], %14 {strides = array<i32>} : memref<8x128xf32, #tpu.memory_space<vmem>>, vector<8x128xf32>,
    } else {
    }
    %cst = arith.constant 0.000000e+00 : f32
    %3 = vector.broadcast %cst : f32 to vector<8x128xf32>
    %c0 = arith.constant 0 : index
    %c0_1 = arith.constant 0 : index
    %4 = vector.load %arg1[%c0, %c0_1] : memref<16x128xf32, #tpu.memory_space<vmem>>, vector<16x128xf32>
    %c0_2 = arith.constant 0 : index
    %c0_3 = arith.constant 0 : index
    %5 = vector.load %arg2[%c0_2, %c0_3] : memref<16x128xf32, #tpu.memory_space<vmem>>, vector<16x128xf32>
    %6 = arith.subf %4, %5 : vector<16x128xf32>
    %7 = arith.mulf %6, %6 : vector<16x128xf32>
    %8 = vector.shape_cast %7 : vector<16x128xf32> to vector<2x8x128xf32>
    %cst_4 = arith.constant dense<0.000000e+00> : vector<8x128xf32>
    %9 = vector.multi_reduction <add>, %8, %cst_4 [0] : vector<2x8x128xf32> to vector<8x128xf32>
    %10 = arith.addf %3, %9 : vector<8x128xf32>
    %c0_5 = arith.constant 0 : index
    %c0_6 = arith.constant 0 : index
    %11 = vector.load %arg3[%c0_5, %c0_6] : memref<8x128xf32, #tpu.memory_space<vmem>>, vector<8x128xf32>
    %12 = arith.addf %11, %10 : vector<8x128xf32>
    %c0_7 = arith.constant 0 : index
    %c0_8 = arith.constant 0 : index
    %13 = vector.load %arg3[%c0_7, %c0_8] : memref<8x128xf32, #tpu.memory_space<vmem>>, vector<8x128xf32>
    tpu.vector_store %arg3[%c0_7, %c0_8], %12 {strides = array<i32>} : memref<8x128xf32, #tpu.memory_space<vmem>>, vector<8x128xf32>,
    return
  }
  func.func @transform_0(%arg0: i32) -> (i32, i32) {
    %c0_i32 = arith.constant 0 : i32
    %c0_i32_0 = arith.constant 0 : i32
    return %arg0, %c0_i32 : i32, i32
  }
  func.func @transform_1(%arg0: i32) -> (i32, i32) {
    %c0_i32 = arith.constant 0 : i32
    %c0_i32_0 = arith.constant 0 : i32
    return %arg0, %c0_i32 : i32, i32
  }
  func.func @transform_2(%arg0: i32) -> (i32, i32) {
    %c0_i32 = arith.constant 0 : i32
    %c0_i32_0 = arith.constant 0 : i32
    %c0_i32_1 = arith.constant 0 : i32
    return %c0_i32, %c0_i32_0 : i32, i32
  }
}

</mosaic_0001>

<bundles_post_ra>
// kernel: tpu_custom_call.1
= control target key start
LH: loop header
LB: loop body
LE: loop exit
PB: predicated region body
PF: predicated region fallthrough
CT: control target
= control target key end

     0   :  { %7 = vsyncpa [#allocation3], 0  ;;  %s175_s0 = inlined_call_operand.hbm [shape: f32[16,128], index: 0, kind: input, shape index: {}]   ;;  %s176_s1 = inlined_call_operand.hbm [shape: f32[16,128], index: 1, kind: input, shape index: {}]   ;;  %s177_s2 = inlined_call_operand.hbm [shape: f32[8,128], index: 2, kind: output, shape index: {}]  }
   0x1   :  { %8 = vsyncpa [#allocation6], 0 }
   0x2   :  { %9 = vsyncpa [#allocation4], 0  ;;  %s146_s9 = smov [#allocation2]  }
   0x3   :  { %s15_s10 = sshll.u32 %s146_s9, 4  ;;  %s16_s10 = int_to_ptr.vmem [resolvable:$true] %s15_s10 }
   0x4   :  { %s88_s11 = scalar_lea.vmem %s16_s10, 256  ;;  %p93_p1 = scmp.lt.s32.totalorder %s16_s10, %s16_s10 }
   0x5   :  { %p89_p0 = scmp.ne.s32.totalorder %s16_s10, %s88_s11  ;;  %p94_p2 = scmp.lt.s32.totalorder %s88_s11, %s88_s11 }
   0x7   :  { %p95_p3 = por %p94_p2, %p93_p1 }
   0x9   :  { %p96_p4 = pnand %p95_p3, %p89_p0 }
   0xb   :  { %99 = shalt.err (!%p96_p4)
}
   0xc   :  { %s147_s12 = smov 128   ;;  %s148_s13 = smov 8  }
   0xd   :  { %21 = dma.hbm_to_vmem [thread:$0]  %s175_s0, 256, %s16_s10, [#allocation3], %s147_s12, %s147_s12, %s148_s13  }
   0xe   :  { %s149_s16 = smov [#allocation5]  }
   0xf   :  { %s27_s17 = sshll.u32 %s149_s16, 4  ;;  %s28_s17 = int_to_ptr.vmem [resolvable:$true] %s27_s17 }
  0x10   :  { %s108_s18 = scalar_lea.vmem %s28_s17, 256  ;;  %p113_p6 = scmp.lt.s32.totalorder %s28_s17, %s28_s17 }
  0x11   :  { %p109_p5 = scmp.ne.s32.totalorder %s28_s17, %s108_s18  ;;  %p114_p7 = scmp.lt.s32.totalorder %s108_s18, %s108_s18 }
  0x13   :  { %p115_p8 = por %p114_p7, %p113_p6 }
  0x15   :  { %p116_p9 = pnand %p115_p8, %p109_p5 }
  0x17   :  { %119 = shalt.err (!%p116_p9)
}
  0x18   :  { %33 = dma.hbm_to_vmem [thread:$0]  %s176_s1, 256, %s28_s17, [#allocation6], %s147_s12, %s147_s12, %s148_s13  }
  0x19   :  { %140 = dma.done.wait [#allocation3], 256  }
  0x1a   :  { %141 = vsyncadd [#allocation3], 4294967040 }
  0x1b   :  { %142 = dma.done.wait [#allocation6], 256  }
  0x1c   :  { %143 = vsyncadd [#allocation6], 4294967040  ;;  %v45_v0 = vld [vmem:[#allocation2] sm:$0xff]  ;;  %v46_v1 = vld [vmem:[#allocation2 + $0x8] sm:$0xff]  ;;  %s150_s0 = smov [#allocation7]  }
  0x1d   :  { %v47_v2 = vld [vmem:[#allocation5] sm:$0xff]  ;;  %v48_v3 = vld [vmem:[#allocation5 + $0x8] sm:$0xff]  ;;  %s64_s21 = sshll.u32 %s150_s0, 4  ;;  %s65_s21 = int_to_ptr.vmem [resolvable:$true] %s64_s21 }
  0x1e   :  { %v49_v4 = vsub.f32 %v45_v0, %v47_v2  ;;  %v50_v5 = vsub.f32 %v46_v1, %v48_v3  ;;  %s120_s22 = scalar_lea.vmem %s65_s21, 128  ;;  %p125_p11 = scmp.lt.s32.totalorder %s65_s21, %s65_s21 }
  0x1f   :  { %p121_p10 = scmp.ne.s32.totalorder %s65_s21, %s120_s22  ;;  %p126_p12 = scmp.lt.s32.totalorder %s120_s22, %s120_s22 }
  0x20   :  { %v51_v6 = vmul.f32 %v49_v4, %v49_v4  ;;  %v52_v7 = vmul.f32 %v50_v5, %v50_v5 }
  0x21   :  { %p127_p13 = por %p126_p12, %p125_p11 }
  0x22   :  { %v53_v8 = vadd.f32 %v52_v7, %v51_v6 }
  0x23   :  { %p128_p0 = pnand %p127_p13, %p121_p10 }
  0x24   :  { %57 = vst [vmem:[#allocation7] sm:$0xff] %v53_v8 }
  0x25   :  { %131 = shalt.err (!%p128_p0)
}
  0x26   :  { %67 = dma.vmem_to_hbm [thread:$0]  %s65_s21, 128, %s177_s2, [#allocation4]  }
  0x27   :  { %144 = dma.done.wait [#allocation4], 128  }
  0x28   :  { %145 = vsyncadd [#allocation4], 4294967168 }
  0x29   :  { %71 = vsyncpa [#allocation3], 1 }
  0x2a   :  { %72 = vsyncpa [#allocation6], 1 }
  0x2b   :  { %73 = vsyncpa [#allocation4], 1 }

</bundles_post_ra>
